<compile_context>
chip_gen: v7x
topology: tpu7x:2x2x1
jax: 0.10.0
libtpu: 0.0.40
codegen_flags: <defaults>
</compile_context>

<pallas_src>
import functools

import jax
import jax.numpy as jnp
from jax.experimental import pallas as pl
from jax.experimental.pallas import tpu as pltpu

LOG_STD_MIN = -5.0
LOG_STD_MAX = 2.0


def _policy_mean_kernel(xT_ref, w1_ref, b1_ref, w2_ref, b2_ref, w3_ref, b3_ref, o_ref):
    """Fused 3-layer MLP in transposed (feature, batch) layout; one batch tile per step.

    xT_ref: (d_in, tile_b)    wK_ref: (d_out_k, d_in_k)    bK_ref: (d_out_k, 1)
    o_ref : (act_dim, tile_b)
    """
    h = jnp.dot(w1_ref[...], xT_ref[...], preferred_element_type=jnp.float32) + b1_ref[...]
    h = jnp.maximum(h, 0.0)
    h = jnp.dot(w2_ref[...], h, preferred_element_type=jnp.float32) + b2_ref[...]
    h = jnp.maximum(h, 0.0)
    o_ref[...] = jnp.dot(w3_ref[...], h, preferred_element_type=jnp.float32) + b3_ref[...]


def _round_up(x, m):
    return ((x + m - 1) // m) * m


@functools.partial(jax.jit, static_argnames=("tile_b",))
def gaussian_policy_forward(obs, w1, b1, w2, b2, w3, b3, log_std, *, tile_b=512):
    """Computes (mean, scale_tril) of the Gaussian policy.

    obs:     (B, state_dim) f32
    wK:      (out_k, in_k)  f32  (native PyTorch nn.Linear layout)
    bK:      (out_k,)       f32
    log_std: (act_dim,)     f32
    Returns: mean (B, act_dim) f32, scale_tril (act_dim, act_dim) f32
    """
    B, d_in = obs.shape
    d_h1 = w1.shape[0]
    d_h2 = w2.shape[0]
    d_act = w3.shape[0]

    # Lane-dense batch tile: multiple of 128; aim for >= 2 grid steps (v7x megacore).
    tile = max(128, min(_round_up(tile_b, 128), _round_up(max(B // 2, 1), 128)))
    b_pad = _round_up(B, tile)

    xT = obs.T                                   # (d_in, B): batch on the lane axis
    if b_pad != B:
        xT = jnp.pad(xT, ((0, 0), (0, b_pad - B)))

    b1c = b1.reshape(d_h1, 1)
    b2c = b2.reshape(d_h2, 1)
    b3c = b3.reshape(d_act, 1)

    grid = (b_pad // tile,)
    full = lambda shape: pl.BlockSpec(shape, lambda i: (0, 0))   # resident weights/biases

    flops = 2 * b_pad * (d_in * d_h1 + d_h1 * d_h2 + d_h2 * d_act)
    bytes_accessed = 4 * (d_in * b_pad + d_act * b_pad
                          + d_in * d_h1 + d_h1 * d_h2 + d_h2 * d_act
                          + d_h1 + d_h2 + d_act)

    mean_t = pl.pallas_call(
        _policy_mean_kernel,
        out_shape=jax.ShapeDtypeStruct((d_act, b_pad), jnp.float32),
        grid_spec=pltpu.PrefetchScalarGridSpec(
            num_scalar_prefetch=0,
            grid=grid,
            in_specs=[
                pl.BlockSpec((d_in, tile), lambda i: (0, i)),
                full((d_h1, d_in)),
                full((d_h1, 1)),
                full((d_h2, d_h1)),
                full((d_h2, 1)),
                full((d_act, d_h2)),
                full((d_act, 1)),
            ],
            out_specs=pl.BlockSpec((d_act, tile), lambda i: (0, i)),
        ),
        compiler_params=pltpu.CompilerParams(
            dimension_semantics=("parallel",),
        ),
        cost_estimate=pl.CostEstimate(
            flops=flops, transcendentals=0, bytes_accessed=bytes_accessed),
    )(xT, w1, b1c, w2, b2c, w3, b3c)

    mean = mean_t[:, :B].T                       # (B, act_dim)

    # Distribution parameters: tiny per-parameter ops, done in plain JAX.
    # TODO(synk): torch.distributions.MultivariateNormal (sampling / log_prob) has no
    # Pallas equivalent; we return its parameters (mean, scale_tril) instead.
    std = jnp.exp(jnp.clip(log_std, LOG_STD_MIN, LOG_STD_MAX))
    scale_tril = jnp.diag(std)
    return mean, scale_tril


def _init_linear(key, fan_in, fan_out):
    """torch.nn.Linear default init; weight kept in torch (out, in) layout."""
    kw, kb = jax.random.split(key)
    bound = 1.0 / (fan_in ** 0.5)
    w = jax.random.uniform(kw, (fan_out, fan_in), jnp.float32, -bound, bound)
    b = jax.random.uniform(kb, (fan_out,), jnp.float32, -bound, bound)
    return w, b


def _reference_forward(obs, w1, b1, w2, b2, w3, b3, log_std):
    h = jnp.maximum(obs @ w1.T + b1, 0.0)
    h = jnp.maximum(h @ w2.T + b2, 0.0)
    mean = h @ w3.T + b3
    std = jnp.exp(jnp.clip(log_std, LOG_STD_MIN, LOG_STD_MAX))
    return mean, jnp.diag(std)


if __name__ == "__main__":
    # Small model dims (state_dim=16, hidden=32, act_dim=4); batch sized so the
    # kernel runs 2 lane-dense 512-row tiles (both v7x TensorCores get a tile).
    state_dim, hidden_dim, act_dim = 16, 32, 4
    B = 1024
    max_action = 1.0   # unused in forward() (only in .act()); kept for parity

    key = jax.random.PRNGKey(0)
    kx, k1, k2, k3, ks = jax.random.split(key, 5)

    obs = jax.random.normal(kx, (B, state_dim), jnp.float32)
    w1, b1 = _init_linear(k1, state_dim, hidden_dim)
    w2, b2 = _init_linear(k2, hidden_dim, hidden_dim)
    w3, b3 = _init_linear(k3, hidden_dim, act_dim)
    log_std = jax.random.uniform(ks, (act_dim,), jnp.float32, -6.0, 3.0)  # exercises clamp

    mean, scale_tril = gaussian_policy_forward(
        obs, w1, b1, w2, b2, w3, b3, log_std, tile_b=512)
    mean = jax.block_until_ready(mean)
    scale_tril = jax.block_until_ready(scale_tril)

    mean_ref, tril_ref = _reference_forward(obs, w1, b1, w2, b2, w3, b3, log_std)
    assert mean.shape == (B, act_dim), mean.shape
    assert scale_tril.shape == (act_dim, act_dim), scale_tril.shape
    assert jnp.allclose(mean, mean_ref, atol=1e-4, rtol=1e-4), "mean mismatch vs reference"
    assert jnp.allclose(scale_tril, tril_ref, atol=1e-6, rtol=1e-6), "scale_tril mismatch"

    print("KERNEL_OK")
</pallas_src>

<mosaic_0001>
module attributes {stable_mosaic.version = 11 : i64} {
  func.func @_policy_mean_kernel(%arg0: i32, %arg1: memref<16x512xf32, #tpu.memory_space<vmem>>, %arg2: memref<32x16xf32, #tpu.memory_space<vmem>>, %arg3: memref<32x1xf32, #tpu.memory_space<vmem>>, %arg4: memref<32x32xf32, #tpu.memory_space<vmem>>, %arg5: memref<32x1xf32, #tpu.memory_space<vmem>>, %arg6: memref<4x32xf32, #tpu.memory_space<vmem>>, %arg7: memref<4x1xf32, #tpu.memory_space<vmem>>, %arg8: memref<4x512xf32, #tpu.memory_space<vmem>>) attributes {dimension_semantics = [#tpu.dimension_semantics<parallel>], iteration_bounds = array<i64: 2>, scalar_prefetch = 0 : i64, scratch_operands = 0 : i64, tpu.core_type = #tpu.core_type<tc>, window_params = [{transform_indices = @transform_0, window_bounds = array<i64: 16, 512>}, {pipeline_mode = #tpu.pipeline_mode<synchronous>, transform_indices = @transform_1, window_bounds = array<i64: 32, 16>}, {pipeline_mode = #tpu.pipeline_mode<synchronous>, transform_indices = @transform_2, window_bounds = array<i64: 32, 1>}, {pipeline_mode = #tpu.pipeline_mode<synchronous>, transform_indices = @transform_3, window_bounds = array<i64: 32, 32>}, {pipeline_mode = #tpu.pipeline_mode<synchronous>, transform_indices = @transform_4, window_bounds = array<i64: 32, 1>}, {pipeline_mode = #tpu.pipeline_mode<synchronous>, transform_indices = @transform_5, window_bounds = array<i64: 4, 32>}, {pipeline_mode = #tpu.pipeline_mode<synchronous>, transform_indices = @transform_6, window_bounds = array<i64: 4, 1>}, {transform_indices = @transform_7, window_bounds = array<i64: 4, 512>}]} {
    %c0 = arith.constant 0 : index
    %c0_0 = arith.constant 0 : index
    %0 = vector.load %arg2[%c0, %c0_0] : memref<32x16xf32, #tpu.memory_space<vmem>>, vector<32x16xf32>
    %c0_1 = arith.constant 0 : index
    %c0_2 = arith.constant 0 : index
    %1 = vector.load %arg1[%c0_1, %c0_2] : memref<16x512xf32, #tpu.memory_space<vmem>>, vector<16x512xf32>
    %cst = arith.constant dense<0.000000e+00> : vector<32x512xf32>
    %2 = tpu.matmul %0, %1, %cst {dimension_numbers = #tpu.dot_dimension_numbers<[1], [0], [0], [1], [0, 0, 1, 1], [], []>} : vector<32x16xf32>, vector<16x512xf32>, vector<32x512xf32> -> vector<32x512xf32>
    %c0_3 = arith.constant 0 : index
    %c0_4 = arith.constant 0 : index
    %3 = vector.load %arg3[%c0_3, %c0_4] : memref<32x1xf32, #tpu.memory_space<vmem>>, vector<32x1xf32>
    %4 = vector.broadcast %3 : vector<32x1xf32> to vector<32x512xf32>
    %5 = arith.addf %2, %4 : vector<32x512xf32>
    %cst_5 = arith.constant 0.000000e+00 : f32
    %6 = vector.broadcast %cst_5 : f32 to vector<32x512xf32>
    %7 = arith.maximumf %5, %6 : vector<32x512xf32>
    %c0_6 = arith.constant 0 : index
    %c0_7 = arith.constant 0 : index
    %8 = vector.load %arg4[%c0_6, %c0_7] : memref<32x32xf32, #tpu.memory_space<vmem>>, vector<32x32xf32>
    %cst_8 = arith.constant dense<0.000000e+00> : vector<32x512xf32>
    %9 = tpu.matmul %8, %7, %cst_8 {dimension_numbers = #tpu.dot_dimension_numbers<[1], [0], [0], [1], [0, 0, 1, 1], [], []>} : vector<32x32xf32>, vector<32x512xf32>, vector<32x512xf32> -> vector<32x512xf32>
    %c0_9 = arith.constant 0 : index
    %c0_10 = arith.constant 0 : index
    %10 = vector.load %arg5[%c0_9, %c0_10] : memref<32x1xf32, #tpu.memory_space<vmem>>, vector<32x1xf32>
    %11 = vector.broadcast %10 : vector<32x1xf32> to vector<32x512xf32>
    %12 = arith.addf %9, %11 : vector<32x512xf32>
    %cst_11 = arith.constant 0.000000e+00 : f32
    %13 = vector.broadcast %cst_11 : f32 to vector<32x512xf32>
    %14 = arith.maximumf %12, %13 : vector<32x512xf32>
    %c0_12 = arith.constant 0 : index
    %c0_13 = arith.constant 0 : index
    %15 = vector.load %arg6[%c0_12, %c0_13] : memref<4x32xf32, #tpu.memory_space<vmem>>, vector<4x32xf32>
    %cst_14 = arith.constant dense<0.000000e+00> : vector<4x512xf32>
    %16 = tpu.matmul %15, %14, %cst_14 {dimension_numbers = #tpu.dot_dimension_numbers<[1], [0], [0], [1], [0, 0, 1, 1], [], []>} : vector<4x32xf32>, vector<32x512xf32>, vector<4x512xf32> -> vector<4x512xf32>
    %c0_15 = arith.constant 0 : index
    %c0_16 = arith.constant 0 : index
    %17 = vector.load %arg7[%c0_15, %c0_16] : memref<4x1xf32, #tpu.memory_space<vmem>>, vector<4x1xf32>
    %18 = vector.broadcast %17 : vector<4x1xf32> to vector<4x512xf32>
    %19 = arith.addf %16, %18 : vector<4x512xf32>
    %c0_17 = arith.constant 0 : index
    %c0_18 = arith.constant 0 : index
    %20 = vector.load %arg8[%c0_17, %c0_18] : memref<4x512xf32, #tpu.memory_space<vmem>>, vector<4x512xf32>
    tpu.vector_store %arg8[%c0_17, %c0_18], %19 {strides = array<i32>} : memref<4x512xf32, #tpu.memory_space<vmem>>, vector<4x512xf32>,
    return
  }
  func.func @transform_0(%arg0: i32) -> (i32, i32) {
    %c0_i32 = arith.constant 0 : i32
    %c0_i32_0 = arith.constant 0 : i32
    return %c0_i32, %arg0 : i32, i32
  }
  func.func @transform_1(%arg0: i32) -> (i32, i32) {
    %c0_i32 = arith.constant 0 : i32
    %c0_i32_0 = arith.constant 0 : i32
    %c0_i32_1 = arith.constant 0 : i32
    return %c0_i32, %c0_i32_0 : i32, i32
  }
  func.func @transform_2(%arg0: i32) -> (i32, i32) {
    %c0_i32 = arith.constant 0 : i32
    %c0_i32_0 = arith.constant 0 : i32
    %c0_i32_1 = arith.constant 0 : i32
    return %c0_i32, %c0_i32_0 : i32, i32
  }
  func.func @transform_3(%arg0: i32) -> (i32, i32) {
    %c0_i32 = arith.constant 0 : i32
    %c0_i32_0 = arith.constant 0 : i32
    %c0_i32_1 = arith.constant 0 : i32
    return %c0_i32, %c0_i32_0 : i32, i32
  }
  func.func @transform_4(%arg0: i32) -> (i32, i32) {
    %c0_i32 = arith.constant 0 : i32
    %c0_i32_0 = arith.constant 0 : i32
    %c0_i32_1 = arith.constant 0 : i32
    return %c0_i32, %c0_i32_0 : i32, i32
  }
  func.func @transform_5(%arg0: i32) -> (i32, i32) {
    %c0_i32 = arith.constant 0 : i32
    %c0_i32_0 = arith.constant 0 : i32
    %c0_i32_1 = arith.constant 0 : i32
    return %c0_i32, %c0_i32_0 : i32, i32
  }
  func.func @transform_6(%arg0: i32) -> (i32, i32) {
    %c0_i32 = arith.constant 0 : i32
    %c0_i32_0 = arith.constant 0 : i32
    %c0_i32_1 = arith.constant 0 : i32
    return %c0_i32, %c0_i32_0 : i32, i32
  }
  func.func @transform_7(%arg0: i32) -> (i32, i32) {
    %c0_i32 = arith.constant 0 : i32
    %c0_i32_0 = arith.constant 0 : i32
    return %c0_i32, %arg0 : i32, i32
  }
}

</mosaic_0001>

<bundles_post_ra>
// kernel: gaussian_policy_forward.1
= control target key start
LH: loop header
LB: loop body
LE: loop exit
PB: predicated region body
PF: predicated region fallthrough
CT: control target
= control target key end

     0   :  { %12 = vsyncpa [#allocation4], 0  ;;  %s1563_s0 = inlined_call_operand.vmem [shape: f32[16,1024], index: 0, kind: input, shape index: {}]   ;;  %s1564_s1 = inlined_call_operand.vmem [shape: f32[32,16], index: 1, kind: input, shape index: {}]   ;;  %s1565_s2 = inlined_call_operand.vmem [shape: f32[32,1], index: 2, kind: input, shape index: {}]   ;;  %s1566_s3 = inlined_call_operand.hbm [shape: f32[32,32], index: 3, kind: input, shape index: {}]   ;;  %s1567_s4 = inlined_call_operand.vmem [shape: f32[32,1], index: 4, kind: input, shape index: {}]   ;;  %s1568_s5 = inlined_call_operand.vmem [shape: f32[4,32], index: 5, kind: input, shape index: {}]   ;;  %s1569_s6 = inlined_call_operand.vmem [shape: f32[4,1], index: 6, kind: input, shape index: {}]   ;;  %s1570_s7 = inlined_call_operand.hbm [shape: f32[4,1024], index: 7, kind: output, shape index: {}]  }
   0x1   :  { %13 = vsyncpa [#allocation5], 0 }
   0x2   :  { %15 = vsyncpa [#allocation5 + $0x1], 0  ;;  %s1334_s24 = smov 0   ;;  %s1336_s25 = smov 0  }
   0x3   :  { %s1338_s26 = smov 0   ;;  %s1340_s27 = smov 0  }
   0x4 LB: > { %s1355_s28 = sadd.s32 4294967295, %s1286_s27   ;;  %s1060_s29 = sadd.s32 4294967294, %s1286_s27   ;;  %s1286_s27 = sphi %s1340_s27, %s1588_s27   ;;  %s1282_s26 = sphi %s1338_s26, %s1587_s26   ;;  %s1278_s25 = sphi %s1336_s25, %s1586_s25   ;;  %s1274_s24 = sphi %s1334_s24, %s1585_s24  }
   0x5   : > { %s1359_s30 = sadd.s32 1, %s1286_s27   ;;  %s28_s8 = sadd.s32 1, %s1282_s26 }
   0x6   : > { %s25_s9 = ssub.s32 %s1286_s27, %s1359_s30  ;;  %p35_p0 = scmp.ne.s32.totalorder %s1282_s26, %s1278_s25 }
   0x7   : > { %p26_p1 = scmp.eq.s32.totalorder %s25_s9, 0  ;;  %p36_p2 = scmp.eq.s32.totalorder %s1286_s27, 0 }
   0x8   : > { %p191_p3 = scmp.eq.s32.totalorder %s1355_s28, 1  ;;  %p196_p4 = scmp.ne.s32.totalorder %s1278_s25, %s1274_s24 }
   0x9   : > { %s1371_s10 = scalar_select %p26_p1, %s1282_s26, %s28_s8  }
   0xa   : > { %p1373_p5 = por %p36_p2, %p35_p0  ;;  %p1377_p6 = por %p191_p3, %p35_p0 }
   0xb   : > { %p197_p7 = scmp.eq.s32.totalorder %s1060_s29, 1  ;;  %p1061_p8 = scmp.ge.s32.totalorder %s1286_s27, 1 }
   0xc   : > { %s1574_s11 = scalar_select %p1373_p5, 1, 0 }
   0xd   : > { %s1575_s12 = scalar_select %p1377_p6, 1, 0 }
   0xe   : > { %p204_p9 = scmp.lt.s32.totalorder %s1286_s27, 3  ;;  %p1383_p10 = por %p197_p7, %p196_p4 }
   0xf   : > { %p1571_p11 = scmp.eq.s32.totalorder %s1355_s28, 0  ;;  %s1288_s15 = smov [#allocation3]  }
  0x10   : > { %s1576_s13 = scalar_select %p1383_p10, 1, 0 }
  0x11   : > { %p1388_p12 = pnand %p1061_p8, %p204_p9  ;;  %s222_s16 = sshll.u32 %s1288_s15, 4  ;;  %s223_s16 = int_to_ptr.vmem [resolvable:$true] %s222_s16 }
  0x12   : > { %s1192_s20 = scalar_lea.hbm %s1566_s3, 512 }
  0x13   : > { %s1577_s14 = scalar_select %p1388_p12, 1, 0 }
  0x14   : > { %p1142_p13 = pneg %p1388_p12  ;;  %p1193_p1 = scmp.ne.s32.totalorder %s1566_s3, %s1192_s20 }
  0x15   : > { %p1199_p7 = scmp.lt.u32.totalorder %s1192_s20, %s1566_s3 }
  0x16   : > { %p1396_p0 = pnand %p1571_p11, %p1142_p13 }
  0x18   : > { %p1194_p2 = pneg %p1396_p0 }
  0x1a   : > { %p1195_p3 = pnand %p1194_p2, %p1193_p1 }
  0x1c   : > { %p1196_p4 = pneg %p1195_p3 }
  0x1e   : > { %p1201_p8 = pnand %p1199_p7, %p1196_p4 }
  0x20   : > { %1204 = shalt.err (!%p1201_p8)
}
  0x21   : > { %s1205_s8 = scalar_lea.vmem %s223_s16, 512  ;;  %p1213_p10 = scmp.lt.s32.totalorder %s223_s16, %s223_s16 }
  0x22   : > { %p1206_p9 = scmp.ne.s32.totalorder %s223_s16, %s1205_s8  ;;  %p1214_p6 = scmp.lt.s32.totalorder %s1205_s8, %s1205_s8 }
  0x24   : > { %p1208_p13 = pnand %p1206_p9, %p1194_p2  ;;  %p1215_p12 = por %p1214_p6, %p1213_p10 }
  0x26   : > { %p1209_p11 = pneg %p1208_p13 }
  0x28   : > { %p1216_p5 = pnand %p1215_p12, %p1209_p11 }
  0x2a   : > { %1219 = shalt.err (!%p1216_p5)
}
  0x2b   : > { %s1289_s9 = smov 128   ;;  %s1290_s15 = smov 8  }
  0x2c   : > { %1145 = dma.hbm_to_vmem [thread:$0]  (!%p1396_p0), %s1566_s3, 512, %s223_s16, [#allocation4], %s1289_s9, %s1289_s9, %s1290_s15  }
  0x2d   : > { %p1063_p1 = scmp.ge.s32.totalorder %s1286_s27, 2 }
  0x2e   : > { %p1579_p2 = scmp.ne.s32.totalorder (!%p1063_p1), %s1574_s11, 0 }
  0x2f   : > { %241 = sbr.rel (%p1063_p1) target bundleno = 62 (0x3e), region = 40 }
  0x36   : > { %244 = sbr.rel (!%p1579_p2) target bundleno = 62 (0x3e), region = 44  ;;  %s246_s20 = sand.u32 (%p1579_p2), 1, %s1282_s26  }
  0x37   : > { %s1094_s21 = sshll.u32 (%p1579_p2), %s1286_s27, 5  ;;  %s1064_s22 = sshll.u32 (%p1579_p2), %s246_s20, 6 }
  0x38   : > { %s251_s17 = scalar_lea.vmem (%p1579_p2), %s1563_s0, %s1094_s21  ;;  %s248_s16 = scalar_lea.vmem (%p1579_p2), [#allocation2], %s1064_s22 }
  0x39   : > { %v264_v0 = vld [vmem:[%s251_s17] sm:$0xff] (%p1579_p2)  ;;  %v266_v1 = vld [vmem:[%s251_s17 + $0x8] sm:$0xff] (%p1579_p2)  ;;  %v268_v2 = vld [vmem:[%s251_s17 + $0x10] sm:$0xff] (%p1579_p2) }
  0x3a   : > { %265 = vst [vmem:[%s248_s16] sm:$0xff] (%p1579_p2), %v264_v0  ;;  %267 = vst [vmem:[%s248_s16 + $0x8] sm:$0xff] (%p1579_p2), %v266_v1  ;;  %v270_v3 = vld [vmem:[%s251_s17 + $0x18] sm:$0xff] (%p1579_p2)  ;;  %v272_v4 = vld [vmem:[%s251_s17 + $0x40] sm:$0xff] (%p1579_p2) }
  0x3b   : > { %269 = vst [vmem:[%s248_s16 + $0x10] sm:$0xff] (%p1579_p2), %v268_v2  ;;  %v274_v5 = vld [vmem:[%s251_s17 + $0x48] sm:$0xff] (%p1579_p2)  ;;  %271 = vst [vmem:[%s248_s16 + $0x18] sm:$0xff] (%p1579_p2), %v270_v3  ;;  %v276_v6 = vld [vmem:[%s251_s17 + $0x50] sm:$0xff] (%p1579_p2) }
  0x3c   : > { %273 = vst [vmem:[%s248_s16 + $0x20] sm:$0xff] (%p1579_p2), %v272_v4  ;;  %275 = vst [vmem:[%s248_s16 + $0x28] sm:$0xff] (%p1579_p2), %v274_v5  ;;  %v278_v7 = vld [vmem:[%s251_s17 + $0x58] sm:$0xff] (%p1579_p2) }
  0x3d   : > { %277 = vst [vmem:[%s248_s16 + $0x30] sm:$0xff] %v276_v6  ;;  %279 = vst [vmem:[%s248_s16 + $0x38] sm:$0xff] %v278_v7 }
  0x3e PF: > { %p1580_p5 = scmp.ne.s32.totalorder %s1577_s14, 0 }
  0x3f   : > { %s1429_s11 = sand.u32 (!%p1580_p5), 1, %s1278_s25   ;;  %p1581_p6 = scmp.eq.s32.totalorder (!%p1580_p5), %s1355_s28, 0 }
  0x40   : > { %288 = sbr.rel (%p1580_p5) target bundleno = 782 (0x30e), region = 67  ;;  %s1068_s8 = sshll.u32 (!%p1580_p5), %s1429_s11, 6 }
  0x41   : > { %s293_s9 = scalar_lea.vmem (!%p1580_p5), [#allocation2], %s1068_s8 }
  0x47   : > { %1265 = dma.done.wait (%p1581_p6), [#allocation4], 512   ;;  %p1582_p10 = pmov %p1581_p6 }
  0x48   : > { %v1291_v8 = vmov 0.0   ;;  %v1292_v9 = vmov 0   ;;  %v333_v10 = vld [vmem:[%s293_s9 + $0x8] sm:$0xff]  ;;  %v335_v12 = vld [vmem:[%s293_s9 + $0x18] sm:$0xff]  ;;  %v332_v15 = vld [vmem:[%s293_s9] sm:$0xff]  ;;  %vm364_vm0 = vcmask 130048  }
  0x49   : > { %1267 = vsyncadd (%p1582_p10), [#allocation4], 4294966784  ;;  %441 = vmatprep.mubr.f32.mxu0 %v1291_v8  ;;  %530 = vmatprep.mubr.f32.mxu1 %v1291_v8  ;;  %v337_v11 = vld [vmem:[%s293_s9 + $0x28] sm:$0xff]  ;;  %v339_v14 = vld [vmem:[%s293_s9 + $0x38] sm:$0xff]  ;;  %vm599_vm1 = vcmask 261120   ;;  %s1070_s18 = sshll.u32 %s1429_s11, 4 }
  0x4a   : > { %1190 = vset.pattern.permute.xlu0 %v1292_v9  ;;  %1191 = vset.pattern.permute.xlu1 %v1292_v9  ;;  %v1096_v13 = vpack.c.bf16 %v337_v11, %v333_v10  ;;  %v336_v16 = vld [vmem:[%s293_s9 + $0x20] sm:$0xff]  ;;  %v1100_v17 = vpack.c.bf16 %v339_v14, %v335_v12  ;;  %v334_v19 = vld [vmem:[%s293_s9 + $0x10] sm:$0xff]  ;;  %v341_v25 = vld [vmem:[%s1565_s2 + $0x8] sm:$0xff]  ;;  %s1095_s19 = sshll.u32 %s1355_s28, 8  ;;  %s325_s20 = scalar_lea.vmem [#allocation6], %s1070_s18 }
  0x4b   : > { %v1098_v18 = vpack.c.bf16 %v336_v16, %v332_v15  ;;  %v338_v20 = vld [vmem:[%s293_s9 + $0x30] sm:$0xff]  ;;  %v328_v22 = vld [vmem:[%s1564_s1] sm:$0xff]  ;;  %v343_v26 = vld [vmem:[%s1565_s2 + $0x18] sm:$0xff]  ;;  %s983_s21 = sshll.u32 %s325_s20, 4  ;;  %s1519_s29 = scalar_lea.hbm %s1570_s7, %s1095_s19  ;;  %s1521_s21 = int_to_ptr.vmem [resolvable:$true] %s983_s21 }
  0x4c   : > { %1097 = vmatprep.subr.bf16.mxu0 %v1096_v13  ;;  %v1102_v21 = vpack.c.bf16 %v338_v20, %v334_v19  ;;  %1101 = vmatprep.subr.bf16.mxu1 %v1100_v17  ;;  %v340_v23 = vld [vmem:[%s1565_s2] sm:$0xff]  ;;  %v342_v24 = vld [vmem:[%s1565_s2 + $0x10] sm:$0xff]  ;;  %v329_v27 = vld [vmem:[%s1564_s1 + $0x8] sm:$0xff]  ;;  %s969_s17 = scalar_lea.sflag [#allocation5], %s1429_s11  ;;  %s1220_s16 = scalar_lea.vmem %s1521_s21, 256 }
  0x4d   : > { %1099 = vmatpush1.bf16.msra.mxu0 %v1098_v18  ;;  %346 = vperm.xlu0 %1190, %v340_v23   ;;  %v575_v28 = vld [vmem:[%s1567_s4] sm:$0xff]  ;;  %v576_v29 = vld [vmem:[%s1567_s4 + $0x8] sm:$0xff]  ;;  %v330_v30 = vld [vmem:[%s1564_s1 + $0x10] sm:$0xff]  ;;  %p1221_p11 = scmp.ne.s32.totalorder %s1521_s21, %s1220_s16  ;;  %p1583_p12 = scmp.ne.s32.totalorder %s1575_s12, 0 }
  0x4e   : > { %1103 = vmatpush1.bf16.msra.mxu1 %v1102_v21  ;;  %356 = vperm.xlu1 %1191, %v342_v24   ;;  %v577_v31 = vld [vmem:[%s1567_s4 + $0x10] sm:$0xff]  ;;  %v578_v32 = vld [vmem:[%s1567_s4 + $0x18] sm:$0xff]  ;;  %v807_v34 = vld [vmem:[%s1569_s6] sm:$0xf]  ;;  %s1293_s28 = smov [#allocation6]  }
  0x4f   : > { %v331_v33 = vld [vmem:[%s1564_s1 + $0x18] sm:$0xff]  ;;  %p1222_p0 = pnand %p1221_p11, %p1583_p12  ;;  %s1224_s8 = sshll.u32 %s1293_s28, 4  ;;  %s1225_s8 = int_to_ptr.vmem [resolvable:$false] %s1224_s8 }
  0x50   : > { %1071 = vmatmul.mubr.msk.f32.vlgmr.msra.gmra.mrb[0].mxu0 %vm364_vm0, %v328_v22  ;;  %s1226_s9 = scalar_lea.vmem %s1225_s8, 512  ;;  %p1227_p4 = scmp.lt.s32.totalorder %s1521_s21, %s1225_s8 }
  0x51   : > { %1075 = vmatmul.mubr.msk.f32.vlgmr.msra.gmra.mrb[0].mxu1 %vm364_vm0, %v328_v22  ;;  %447 = vmatprep.mubr.f32.mxu0 %v1291_v8  ;;  %p1223_p3 = pneg %p1222_p0  ;;  %p1228_p7 = scmp.lt.s32.totalorder %s1226_s9, %s1220_s16 }
  0x52   : > { %536 = vmatprep.mubr.f32.mxu1 %v1291_v8  ;;  %351 = vperm.xlu0 %1190, %v341_v25  }
  0x53   : > { %361 = vperm.xlu1 %1191, %v343_v26   ;;  %p1229_p8 = por %p1228_p7, %p1227_p4 }
  0x54   : > { %1072 = vmatmul.mubr.msk.f32.gmra.mrb[2].mxu0 %vm364_vm0, %v329_v27 }
  0x55   : > { %1076 = vmatmul.mubr.msk.f32.gmra.mrb[2].mxu1 %vm364_vm0, %v329_v27  ;;  %453 = vmatprep.mubr.f32.mxu0 %v1291_v8  ;;  %p1230_p9 = pnand %p1229_p8, %p1223_p3 }
  0x56   : > { %542 = vmatprep.mubr.f32.mxu1 %v1291_v8  ;;  %581 = vperm.xlu0 %1190, %v575_v28  }
  0x57   : > { %586 = vperm.xlu1 %1191, %v576_v29  }
  0x58   : > { %1073 = vmatmul.mubr.msk.f32.gmra.mrb[4].mxu0 %vm364_vm0, %v330_v30 }
  0x59   : > { %1077 = vmatmul.mubr.msk.f32.gmra.mrb[4].mxu1 %vm364_vm0, %v330_v30  ;;  %459 = vmatprep.mubr.f32.mxu0 %v1291_v8 }
  0x5a   : > { %548 = vmatprep.mubr.f32.mxu1 %v1291_v8  ;;  %591 = vperm.xlu0 %1190, %v577_v31  }
  0x5b   : > { %596 = vperm.xlu1 %1191, %v578_v32   ;;  %v571_v32 = vld [vmem:[#allocation3] sm:$0xff] }
  0x5c   : > { %1074 = vmatmul.mubr.msk.f32.gmra.mrb[6].mxu0 %vm364_vm0, %v331_v33 }
  0x5d   : > { %1078 = vmatmul.mubr.msk.f32.gmra.mrb[6].mxu1 %vm364_vm0, %v331_v33  ;;  %676 = vmatprep.mubr.f32.mxu0 %v1291_v8  ;;  %v572_v33 = vld [vmem:[#allocation3 + $0x8] sm:$0xff] }
  0x5e   : > { %810 = vperm.xlu0 %1190, %v807_v34   ;;  %765 = vmatprep.mubr.f32.mxu1 %v1291_v8  ;;  %v573_v34 = vld [vmem:[#allocation3 + $0x10] sm:$0xff] }
  0xcc   : > { %v347_v35 = vpop.permute.xlu0 %346 }
  0xcd   : > { %v357_v49 = vpop.permute.xlu1 %356 }
  0xd1   : > { %v352_v41 = vpop.permute.xlu0 %351 }
  0xd2   : > { %v362_v7 = vpop.permute.xlu1 %361 }
 0x123   : > { %v443_v36 = vpop.f32.mrb[0].mxu0 }
 0x124   : > { %v532_v37 = vpop.f32.mrb[0].mxu1  ;;  %v445_v38 = vpop.f32.mrb[1].mxu0  ;;  %v444_v40 = vadd.f32 %v443_v36, %v347_v35 }
 0x125   : > { %v534_v39 = vpop.f32.mrb[1].mxu1  ;;  %v533_v42 = vadd.f32 %v532_v37, %v347_v35  ;;  %v446_v43 = vadd.f32 %v445_v38, %v347_v35 }
 0x126   : > { %v535_v45 = vadd.f32 %v534_v39, %v347_v35  ;;  %v555_v53 = vmax.f32 %v444_v40, 0.0  ;;  %v574_v35 = vld [vmem:[#allocation3 + $0x18] sm:$0xff]  ;;  %v582_v39 = vpop.permute.xlu0 %581 }
 0x127   : > { %v449_v44 = vpop.f32.mrb[2].mxu0  ;;  %v557_v56 = vmax.f32 %v533_v42, 0.0  ;;  %v556_v57 = vmax.f32 %v446_v43, 0.0  ;;  %v587_v42 = vpop.permute.xlu1 %586 }
 0x128   : > { %v450_v46 = vadd.f32 %v449_v44, %v352_v41  ;;  %v538_v47 = vpop.f32.mrb[2].mxu1  ;;  %v451_v48 = vpop.f32.mrb[3].mxu0  ;;  %v558_v61 = vmax.f32 %v535_v45, 0.0 }
 0x129   : > { %v539_v50 = vadd.f32 %v538_v47, %v352_v41  ;;  %v452_v51 = vadd.f32 %v451_v48, %v352_v41  ;;  %v540_v52 = vpop.f32.mrb[3].mxu1 }
 0x12a   : > { %v559_v54 = vmax.f32 %v450_v46, 0.0  ;;  %v541_v55 = vadd.f32 %v540_v52, %v352_v41 }
 0x12b   : > { %v561_v58 = vmax.f32 %v539_v50, 0.0  ;;  %v560_v59 = vmax.f32 %v452_v51, 0.0  ;;  %v455_v60 = vpop.f32.mrb[4].mxu0 }
 0x12c   : > { %v1106_v62 = vpack.c.bf16 %v559_v54, %v555_v53  ;;  %v562_v63 = vmax.f32 %v541_v55, 0.0  ;;  %v544_v0 = vpop.f32.mrb[4].mxu1  ;;  %v457_v1 = vpop.f32.mrb[5].mxu0  ;;  %v456_v6 = vadd.f32 %v455_v60, %v357_v49 }
 0x12d   : > { %v1114_v2 = vpack.c.bf16 %v561_v58, %v557_v56  ;;  %v1104_v3 = vpack.c.bf16 %v560_v59, %v556_v57  ;;  %v546_v4 = vpop.f32.mrb[5].mxu1  ;;  %v545_v9 = vadd.f32 %v544_v0, %v357_v49  ;;  %v458_v10 = vadd.f32 %v457_v1, %v357_v49  ;;  %v592_v1 = vpop.permute.xlu0 %591 }
 0x12e   : > { %v1112_v5 = vpack.c.bf16 %v562_v63, %v558_v61  ;;  %v547_v12 = vadd.f32 %v546_v4, %v357_v49  ;;  %v563_v19 = vmax.f32 %v456_v6, 0.0 }
 0x12f   : > { %v461_v11 = vpop.f32.mrb[6].mxu0  ;;  %1105 = vmatprep.subr.bf16.mxu0 %v1104_v3  ;;  %v565_v22 = vmax.f32 %v545_v9, 0.0  ;;  %v564_v23 = vmax.f32 %v458_v10, 0.0 }
 0x130   : > { %v462_v13 = vadd.f32 %v461_v11, %v362_v7  ;;  %v550_v14 = vpop.f32.mrb[6].mxu1  ;;  %1113 = vmatprep.subr.bf16.mxu1 %v1112_v5  ;;  %v463_v15 = vpop.f32.mrb[7].mxu0  ;;  %1107 = vmatpush1.bf16.msra.mxu0 %v1106_v62  ;;  %v566_v26 = vmax.f32 %v547_v12, 0.0 }
 0x131   : > { %v551_v16 = vadd.f32 %v550_v14, %v362_v7  ;;  %v464_v17 = vadd.f32 %v463_v15, %v362_v7  ;;  %v552_v18 = vpop.f32.mrb[7].mxu1  ;;  %1115 = vmatpush1.bf16.msra.mxu1 %v1114_v2 }
 0x132   : > { %v567_v20 = vmax.f32 %v462_v13, 0.0  ;;  %v553_v21 = vadd.f32 %v552_v18, %v362_v7  ;;  %v597_v7 = vpop.permute.xlu1 %596 }
 0x133   : > { %v569_v24 = vmax.f32 %v551_v16, 0.0  ;;  %v568_v25 = vmax.f32 %v464_v17, 0.0 }
 0x134   : > { %v1110_v27 = vpack.c.bf16 %v567_v20, %v563_v19  ;;  %v570_v28 = vmax.f32 %v553_v21, 0.0 }
 0x135   : > { %v1118_v29 = vpack.c.bf16 %v569_v24, %v565_v22  ;;  %v1108_v30 = vpack.c.bf16 %v568_v25, %v564_v23 }
 0x136   : > { %v1116_v31 = vpack.c.bf16 %v570_v28, %v566_v26 }
 0x137   : > { %1109 = vmatprep.subr.bf16.mxu0 %v1108_v30 }
 0x138   : > { %1117 = vmatprep.subr.bf16.mxu1 %v1116_v31  ;;  %1111 = vmatpush1.bf16.msra.mxu0 %v1110_v27 }
 0x139   : > { %1119 = vmatpush1.bf16.msra.mxu1 %v1118_v29 }
 0x13b   : > { %1079 = vmatmul.mubr.msk.f32.vlgmr.msra.gmra.mrb[8].mxu0 %vm599_vm1, %v571_v32 }
 0x13c   : > { %1083 = vmatmul.mubr.msk.f32.vlgmr.msra.gmra.mrb[8].mxu1 %vm599_vm1, %v571_v32  ;;  %682 = vmatprep.mubr.f32.mxu0 %v1291_v8  ;;  %v806_v32 = vld [vmem:[%s1568_s5] sm:$0xf] }
 0x13d   : > { %771 = vmatprep.mubr.f32.mxu1 %v1291_v8 }
 0x13f   : > { %1080 = vmatmul.mubr.msk.f32.gmra.mrb[10].mxu0 %vm599_vm1, %v572_v33 }
 0x140   : > { %1084 = vmatmul.mubr.msk.f32.gmra.mrb[10].mxu1 %vm599_vm1, %v572_v33  ;;  %688 = vmatprep.mubr.f32.mxu0 %v1291_v8  ;;  %v811_v33 = vpop.permute.xlu0 %810 }
 0x141   : > { %777 = vmatprep.mubr.f32.mxu1 %v1291_v8 }
 0x143   : > { %1081 = vmatmul.mubr.msk.f32.gmra.mrb[12].mxu0 %vm599_vm1, %v573_v34 }
 0x144   : > { %1085 = vmatmul.mubr.msk.f32.gmra.mrb[12].mxu1 %vm599_vm1, %v573_v34  ;;  %694 = vmatprep.mubr.f32.mxu0 %v1291_v8 }
 0x145   : > { %783 = vmatprep.mubr.f32.mxu1 %v1291_v8 }
 0x147   : > { %1082 = vmatmul.mubr.msk.f32.gmra.mrb[14].mxu0 %vm599_vm1, %v574_v35 }
 0x148   : > { %1086 = vmatmul.mubr.msk.f32.gmra.mrb[14].mxu1 %vm599_vm1, %v574_v35  ;;  %880 = vmatprep.mubr.f32.mxu0 %v1291_v8 }
 0x149   : > { %951 = vmatprep.mubr.f32.mxu1 %v1291_v8 }
 0x20e   : > { %v678_v36 = vpop.f32.mrb[8].mxu0 }
 0x20f   : > { %v767_v37 = vpop.f32.mrb[8].mxu1  ;;  %v680_v38 = vpop.f32.mrb[9].mxu0  ;;  %v679_v41 = vadd.f32 %v678_v36, %v582_v39 }
 0x210   : > { %v769_v40 = vpop.f32.mrb[9].mxu1  ;;  %v768_v43 = vadd.f32 %v767_v37, %v582_v39  ;;  %v681_v44 = vadd.f32 %v680_v38, %v582_v39 }
 0x211   : > { %v770_v46 = vadd.f32 %v769_v40, %v582_v39  ;;  %v790_v53 = vmax.f32 %v679_v41, 0.0 }
 0x212   : > { %v684_v45 = vpop.f32.mrb[10].mxu0  ;;  %v792_v55 = vmax.f32 %v768_v43, 0.0  ;;  %v791_v56 = vmax.f32 %v681_v44, 0.0 }
 0x213   : > { %v685_v47 = vadd.f32 %v684_v45, %v587_v42  ;;  %v773_v48 = vpop.f32.mrb[10].mxu1  ;;  %v686_v49 = vpop.f32.mrb[11].mxu0  ;;  %v793_v60 = vmax.f32 %v770_v46, 0.0 }
 0x214   : > { %v774_v50 = vadd.f32 %v773_v48, %v587_v42  ;;  %v687_v51 = vadd.f32 %v686_v49, %v587_v42  ;;  %v775_v52 = vpop.f32.mrb[11].mxu1 }
 0x215   : > { %v794_v54 = vmax.f32 %v685_v47, 0.0  ;;  %v776_v8 = vadd.f32 %v775_v52, %v587_v42 }
 0x216   : > { %v796_v57 = vmax.f32 %v774_v50, 0.0  ;;  %v795_v58 = vmax.f32 %v687_v51, 0.0  ;;  %v690_v59 = vpop.f32.mrb[12].mxu0 }
 0x217   : > { %v1122_v61 = vpack.c.bf16 %v794_v54, %v790_v53  ;;  %v797_v62 = vmax.f32 %v776_v8, 0.0  ;;  %v779_v63 = vpop.f32.mrb[12].mxu1  ;;  %v692_v0 = vpop.f32.mrb[13].mxu0  ;;  %v691_v6 = vadd.f32 %v690_v59, %v592_v1 }
 0x218   : > { %v1130_v2 = vpack.c.bf16 %v796_v57, %v792_v55  ;;  %v1120_v3 = vpack.c.bf16 %v795_v58, %v791_v56  ;;  %v781_v4 = vpop.f32.mrb[13].mxu1  ;;  %v780_v9 = vadd.f32 %v779_v63, %v592_v1  ;;  %v693_v10 = vadd.f32 %v692_v0, %v592_v1 }
 0x219   : > { %v1128_v5 = vpack.c.bf16 %v797_v62, %v793_v60  ;;  %v782_v12 = vadd.f32 %v781_v4, %v592_v1  ;;  %v798_v19 = vmax.f32 %v691_v6, 0.0 }
 0x21a   : > { %v696_v11 = vpop.f32.mrb[14].mxu0  ;;  %1121 = vmatprep.subr.bf16.mxu0 %v1120_v3  ;;  %v800_v22 = vmax.f32 %v780_v9, 0.0  ;;  %v799_v23 = vmax.f32 %v693_v10, 0.0 }
 0x21b   : > { %v697_v13 = vadd.f32 %v696_v11, %v597_v7  ;;  %v785_v14 = vpop.f32.mrb[14].mxu1  ;;  %1129 = vmatprep.subr.bf16.mxu1 %v1128_v5  ;;  %v698_v15 = vpop.f32.mrb[15].mxu0  ;;  %1123 = vmatpush1.bf16.msra.mxu0 %v1122_v61  ;;  %v801_v26 = vmax.f32 %v782_v12, 0.0 }
 0x21c   : > { %v786_v16 = vadd.f32 %v785_v14, %v597_v7  ;;  %v699_v17 = vadd.f32 %v698_v15, %v597_v7  ;;  %v787_v18 = vpop.f32.mrb[15].mxu1  ;;  %1131 = vmatpush1.bf16.msra.mxu1 %v1130_v2 }
 0x21d   : > { %v802_v20 = vmax.f32 %v697_v13, 0.0  ;;  %v788_v21 = vadd.f32 %v787_v18, %v597_v7 }
 0x21e   : > { %v804_v24 = vmax.f32 %v786_v16, 0.0  ;;  %v803_v25 = vmax.f32 %v699_v17, 0.0 }
 0x21f   : > { %v1126_v27 = vpack.c.bf16 %v802_v20, %v798_v19  ;;  %v805_v28 = vmax.f32 %v788_v21, 0.0 }
 0x220   : > { %v1134_v29 = vpack.c.bf16 %v804_v24, %v800_v22  ;;  %v1124_v30 = vpack.c.bf16 %v803_v25, %v799_v23 }
 0x221   : > { %v1132_v31 = vpack.c.bf16 %v805_v28, %v801_v26 }
 0x222   : > { %1125 = vmatprep.subr.bf16.mxu0 %v1124_v30 }
 0x223   : > { %1133 = vmatprep.subr.bf16.mxu1 %v1132_v31  ;;  %1127 = vmatpush1.bf16.msra.mxu0 %v1126_v27 }
 0x224   : > { %1135 = vmatpush1.bf16.msra.mxu1 %v1134_v29 }
 0x226   : > { %1087 = vmatmul.mubr.msk.f32.vlgmr.msra.gmra.mrb[16].mxu0 %vm599_vm1, %v806_v32 }
 0x227   : > { %1088 = vmatmul.mubr.msk.f32.vlgmr.msra.gmra.mrb[16].mxu1 %vm599_vm1, %v806_v32 }
 0x2f9   : > { %v882_v34 = vpop.f32.mrb[16].mxu0 }
 0x2fa   : > { %v883_v35 = vadd.f32 %v882_v34, %v811_v33  ;;  %v953_v36 = vpop.f32.mrb[16].mxu1  ;;  %v884_v37 = vpop.f32.mrb[17].mxu0 }
 0x2fb   : > { %v954_v38 = vadd.f32 %v953_v36, %v811_v33  ;;  %v885_v39 = vadd.f32 %v884_v37, %v811_v33  ;;  %v955_v40 = vpop.f32.mrb[17].mxu1 }
 0x2fc   : > { %v956_v41 = vadd.f32 %v955_v40, %v811_v33 }
 0x2fd   : > { %v962_v42 = vcombine.low %v883_v35, %v885_v39 }
 0x2fe   : > { %v963_v43 = vcombine.low %v954_v38, %v956_v41 }
 0x2ff   : > { %966 = vst [vmem:[%s325_s20] sm:$0xff] %v962_v42 }
 0x300   : > { %967 = vst [vmem:[%s325_s20 + $0x8] sm:$0xff] %v963_v43 }
 0x301   : > { %1233 = shalt.err (!%p1230_p9)
}
 0x302   : > { %s1234_s11 = scalar_lea.hbm %s1519_s29, 256  ;;  %s1238_s18 = scalar_lea.hbm %s1570_s7, 512 }
 0x303   : > { %p1235_p13 = scmp.ne.s32.totalorder %s1519_s29, %s1234_s11  ;;  %p1239_p6 = scmp.lt.u32.totalorder %s1519_s29, %s1570_s7 }
 0x304   : > { %p1240_p10 = scmp.lt.u32.totalorder %s1238_s18, %s1234_s11  ;;  %p1242_p0 = scmp.lt.u32.totalorder %s1234_s11, %s1519_s29 }
 0x305   : > { %p1236_p2 = pnand %p1235_p13, %p1583_p12 }
 0x306   : > { %p1241_p11 = por %p1240_p10, %p1239_p6 }
 0x307   : > { %p1237_p5 = pneg %p1236_p2 }
 0x308   : > { %p1243_p3 = por %p1242_p0, %p1241_p11 }
 0x30a   : > { %p1244_p4 = pnand %p1243_p3, %p1237_p5 }
 0x30c   : > { %1247 = shalt.err (!%p1244_p4)
}
 0x30d   : > { %1140 = dma.vmem_to_hbm [thread:$0]  (%p1583_p12), %s1521_s21, 256, %s1519_s29, %s969_s17  }
 0x30e PF: > { %s995_s22 = sand.u32 1, %s1274_s24   ;;  %p1584_p7 = scmp.ne.s32.totalorder %s1576_s13, 0 }
 0x30f   : > { %s996_s23 = scalar_lea.sflag [#allocation5], %s995_s22 }
 0x310   : > { %p1147_p8 = pnand %p1063_p1, %p1584_p7 }
 0x312   : > { %1269 = dma.done.wait (!%p1147_p8), %s996_s23, 256  }
 0x313   : > { %1271 = vsyncadd (!%p1147_p8), %s996_s23, 4294967040  ;;  %p18_p9 = scmp.ge.s32.totalorder %s1359_s30, 4   ;;  %s1585_s24 = smov %s1278_s25 }
 0x314   : > { %s1586_s25 = smov %s1282_s26  ;;  %s1587_s26 = smov %s1371_s10 }
 0x315   : > { %s1588_s27 = smov %s1359_s30  ;;  %20 = sbr.rel (!%p18_p9) target bundleno = 4 (0x4), region = 116 }
 0x31c   :  { %1001 = vsyncpa [#allocation4], 1 }
 0x31d   :  { %1003 = vsyncpa [#allocation4 + $0x1], 1 }
 0x31e   :  { %1004 = vsyncpa [#allocation5], 1 }
 0x31f   :  { %1006 = vsyncpa [#allocation5 + $0x1], 1 }

</bundles_post_ra>
